<compile_context>
chip_gen: v7x
topology: tpu7x:2x2x1
jax: 0.10.0
libtpu: 0.0.40
codegen_flags: <defaults>
</compile_context>

<pallas_src>
from functools import partial

import jax
import jax.numpy as jnp
from jax.experimental import pallas as pl
from jax.experimental.pallas import tpu as pltpu

LN_EPS = 1e-5  # PyTorch nn.LayerNorm default


def _layer_norm_fused(h, gamma, beta):
    # Single-pass LN: one mean of h and one mean of h*h (halves reduction work).
    s = jnp.mean(h, axis=-1, keepdims=True)
    s2 = jnp.mean(h * h, axis=-1, keepdims=True)
    var = jnp.maximum(s2 - s * s, 0.0)
    return (h - s) * jax.lax.rsqrt(var + LN_EPS) * gamma + beta


def _gelu_exact(h):
    # PyTorch nn.GELU() default = exact erf formulation.
    return 0.5 * h * (1.0 + jax.lax.erf(h * jnp.float32(0.7071067811865476)))


def _gelu_tanh(h):
    # EUP-friendly tanh approximation (use only if ~1e-3 tolerance is acceptable).
    c = jnp.float32(0.7978845608028654)  # sqrt(2/pi)
    return 0.5 * h * (1.0 + jnp.tanh(c * (h + 0.044715 * h * h * h)))


def _classifier_kernel(
    x_ref,
    w1_ref, w2_ref, w3_ref, wo_ref,
    p12_ref,   # (6, hidden): rows = b1, g1, be1, b2, g2, be2
    p3_ref,    # (3, hidden//2): rows = b3, g3, be3
    bo_ref,    # (1, num_emotions)
    out_ref,
    *,
    use_tanh_gelu: bool,
):
    gelu = _gelu_tanh if use_tanh_gelu else _gelu_exact

    x = x_ref[...].astype(jnp.float32)
    p12 = p12_ref[...]
    p3 = p3_ref[...]

    # layer1: Linear -> LayerNorm -> GELU  (Dropout = identity in eval mode)
    h1 = jnp.dot(x, w1_ref[...], preferred_element_type=jnp.float32) + p12[0:1, :]
    h1 = gelu(_layer_norm_fused(h1, p12[1:2, :], p12[2:3, :]))

    # layer2 + residual
    h2 = jnp.dot(h1, w2_ref[...], preferred_element_type=jnp.float32) + p12[3:4, :]
    h2 = gelu(_layer_norm_fused(h2, p12[4:5, :], p12[5:6, :])) + h1

    # layer3
    h3 = jnp.dot(h2, w3_ref[...], preferred_element_type=jnp.float32) + p3[0:1, :]
    h3 = gelu(_layer_norm_fused(h3, p3[1:2, :], p3[2:3, :]))

    # output head (unpadded width: last dim equals full array dim -> legal block)
    out_ref[...] = (
        jnp.dot(h3, wo_ref[...], preferred_element_type=jnp.float32) + bo_ref[...]
    ).astype(out_ref.dtype)


def _round_up(n, m):
    return ((n + m - 1) // m) * m


def _choose_tile(batch, batch_tile):
    """Pick (tile, padded_batch).  Prefers a multiple-of-8 tile that divides the
    8-rounded batch (no jnp.pad copy of x) and caps the tile at half the batch so
    v7x megacore gets >= 2 grid steps."""
    padded8 = _round_up(max(batch, 1), 8)
    half = _round_up(pl.cdiv(padded8, 2), 8)
    target = max(8, min(_round_up(batch_tile, 8), half))
    for d in range(target, 7, -8):
        if padded8 % d == 0:
            if 4 * d >= target:          # dividing tile is large enough -> no pad
                return d, padded8
            break
    return target, _round_up(padded8, target)  # fallback: pad batch to tile multiple


def enhanced_emotion_classifier(
    x,
    params,
    *,
    batch_tile=2048,
    x_dtype=jnp.float32,      # set jnp.bfloat16 on v6e/v7x to halve the x HBM read
    use_tanh_gelu=False,      # set True to move GELU from VALU erf poly to EUP tanh
):
    """x: (batch, input_size) f32. params: dict of weights (see init_params)."""
    batch, input_size = x.shape
    hidden = params["w1"].shape[1]
    h2dim = params["w3"].shape[1]
    num_emotions = params["wo"].shape[1]

    tb, padded_batch = _choose_tile(batch, batch_tile)
    if padded_batch != batch:
        x = jnp.pad(x, ((0, padded_batch - batch), (0, 0)))
    num_tiles = padded_batch // tb

    if x_dtype != x.dtype:
        x = x.astype(x_dtype)

    # Pack the ten tiny per-feature vectors into two slabs (fewer DMA descriptors
    # and VMEM windows than 10 separate (1, n) inputs).
    p12 = jnp.concatenate(
        [params["b1"], params["g1"], params["be1"],
         params["b2"], params["g2"], params["be2"]], axis=0)            # (6, hidden)
    p3 = jnp.concatenate([params["b3"], params["g3"], params["be3"]], axis=0)  # (3, h2)

    # Weights / packed params: full block, constant index -> DMA'd once, then
    # VMEM-resident across grid steps.
    def const_spec(shape):
        return pl.BlockSpec(shape, lambda i: (0, 0))

    in_specs = [
        pl.BlockSpec((tb, input_size), lambda i: (i, 0)),   # x (batch-tiled)
        const_spec((input_size, hidden)),                   # W1
        const_spec((hidden, hidden)),                       # W2
        const_spec((hidden, h2dim)),                        # W3
        const_spec((h2dim, num_emotions)),                  # Wo
        const_spec((6, hidden)),                            # b1,g1,be1,b2,g2,be2
        const_spec((3, h2dim)),                             # b3,g3,be3
        const_spec((1, num_emotions)),                      # bo
    ]
    out_spec = pl.BlockSpec((tb, num_emotions), lambda i: (i, 0))

    out = pl.pallas_call(
        partial(_classifier_kernel, use_tanh_gelu=use_tanh_gelu),
        out_shape=jax.ShapeDtypeStruct((padded_batch, num_emotions), jnp.float32),
        grid=(num_tiles,),
        in_specs=in_specs,
        out_specs=out_spec,
        compiler_params=pltpu.CompilerParams(
            dimension_semantics=("parallel",),   # batch axis: 2x on v7x megacore
        ),
    )(
        x,
        params["w1"], params["w2"], params["w3"], params["wo"],
        p12, p3, params["bo"],
    )
    # No feature-dim slice needed (output already num_emotions wide); only drop
    # padded batch rows in the (rare) fallback-padding case.
    return out if padded_batch == batch else out[:batch]


def init_params(key, input_size, hidden_size, num_emotions):
    """Deterministic synthetic parameter init (weights ~ N(0, 0.02), LN gamma=1, beta=0)."""
    ks = jax.random.split(key, 4)
    h2 = hidden_size // 2

    def lin(k, fan_in, fan_out):
        kw, kb = jax.random.split(k)
        w = jax.random.normal(kw, (fan_in, fan_out), jnp.float32) * 0.02  # already (in, out)
        b = jax.random.normal(kb, (1, fan_out), jnp.float32) * 0.02
        return w, b

    w1, b1 = lin(ks[0], input_size, hidden_size)
    w2, b2 = lin(ks[1], hidden_size, hidden_size)
    w3, b3 = lin(ks[2], hidden_size, h2)
    wo, bo = lin(ks[3], h2, num_emotions)

    ones = lambda n: jnp.ones((1, n), jnp.float32)
    zeros = lambda n: jnp.zeros((1, n), jnp.float32)
    return {
        "w1": w1, "b1": b1, "g1": ones(hidden_size), "be1": zeros(hidden_size),
        "w2": w2, "b2": b2, "g2": ones(hidden_size), "be2": zeros(hidden_size),
        "w3": w3, "b3": b3, "g3": ones(h2), "be3": zeros(h2),
        "wo": wo, "bo": bo,
    }


def _reference(x, p):
    """Pure-JAX reference of the same forward pass (for a sanity check)."""
    def ln(h, g, b):
        mu = jnp.mean(h, axis=-1, keepdims=True)
        var = jnp.mean((h - mu) ** 2, axis=-1, keepdims=True)
        return (h - mu) / jnp.sqrt(var + LN_EPS) * g + b

    def gelu(h):
        return 0.5 * h * (1.0 + jax.lax.erf(h / jnp.sqrt(2.0)))

    h1 = gelu(ln(x @ p["w1"] + p["b1"], p["g1"], p["be1"]))
    h2 = gelu(ln(h1 @ p["w2"] + p["b2"], p["g2"], p["be2"])) + h1
    h3 = gelu(ln(h2 @ p["w3"] + p["b3"], p["g3"], p["be3"]))
    return h3 @ p["wo"] + p["bo"]


if __name__ == "__main__":
    batch, input_size, hidden_size, num_emotions = 24, 32, 64, 8

    key = jax.random.PRNGKey(0)
    kx, kp = jax.random.split(key)
    x = jax.random.normal(kx, (batch, input_size), jnp.float32)
    params = init_params(kp, input_size, hidden_size, num_emotions)

    # batch_tile=8 here to exercise a multi-step grid (3 tiles, no padding) at the
    # small test size; production sizes use the default 2048.
    out = enhanced_emotion_classifier(x, params, batch_tile=8)
    out = jax.block_until_ready(out)

    ref = _reference(x, params)
    assert out.shape == (batch, num_emotions)
    assert jnp.max(jnp.abs(out - ref)) < 1e-4, "mismatch vs pure-JAX reference"

    print("KERNEL_OK")
</pallas_src>

<mosaic_0001>
module attributes {stable_mosaic.version = 11 : i64} {
  func.func @_classifier_kernel(%arg0: i32, %arg1: memref<8x32xf32, #tpu.memory_space<vmem>>, %arg2: memref<32x64xf32, #tpu.memory_space<vmem>>, %arg3: memref<64x64xf32, #tpu.memory_space<vmem>>, %arg4: memref<64x32xf32, #tpu.memory_space<vmem>>, %arg5: memref<32x8xf32, #tpu.memory_space<vmem>>, %arg6: memref<6x64xf32, #tpu.memory_space<vmem>>, %arg7: memref<3x32xf32, #tpu.memory_space<vmem>>, %arg8: memref<1x8xf32, #tpu.memory_space<vmem>>, %arg9: memref<8x8xf32, #tpu.memory_space<vmem>>) attributes {dimension_semantics = [#tpu.dimension_semantics<parallel>], iteration_bounds = array<i64: 3>, scalar_prefetch = 0 : i64, scratch_operands = 0 : i64, tpu.core_type = #tpu.core_type<tc>, window_params = [{transform_indices = @transform_0, window_bounds = array<i64: 8, 32>}, {pipeline_mode = #tpu.pipeline_mode<synchronous>, transform_indices = @transform_1, window_bounds = array<i64: 32, 64>}, {pipeline_mode = #tpu.pipeline_mode<synchronous>, transform_indices = @transform_2, window_bounds = array<i64: 64, 64>}, {pipeline_mode = #tpu.pipeline_mode<synchronous>, transform_indices = @transform_3, window_bounds = array<i64: 64, 32>}, {pipeline_mode = #tpu.pipeline_mode<synchronous>, transform_indices = @transform_4, window_bounds = array<i64: 32, 8>}, {pipeline_mode = #tpu.pipeline_mode<synchronous>, transform_indices = @transform_5, window_bounds = array<i64: 6, 64>}, {pipeline_mode = #tpu.pipeline_mode<synchronous>, transform_indices = @transform_6, window_bounds = array<i64: 3, 32>}, {pipeline_mode = #tpu.pipeline_mode<synchronous>, transform_indices = @transform_7, window_bounds = array<i64: 1, 8>}, {transform_indices = @transform_8, window_bounds = array<i64: 8, 8>}]} {
    %c0 = arith.constant 0 : index
    %c0_0 = arith.constant 0 : index
    %0 = vector.load %arg1[%c0, %c0_0] : memref<8x32xf32, #tpu.memory_space<vmem>>, vector<8x32xf32>
    %c0_1 = arith.constant 0 : index
    %c0_2 = arith.constant 0 : index
    %1 = vector.load %arg6[%c0_1, %c0_2] : memref<6x64xf32, #tpu.memory_space<vmem>>, vector<6x64xf32>
    %c0_3 = arith.constant 0 : index
    %c0_4 = arith.constant 0 : index
    %2 = vector.load %arg7[%c0_3, %c0_4] : memref<3x32xf32, #tpu.memory_space<vmem>>, vector<3x32xf32>
    %c0_5 = arith.constant 0 : index
    %c0_6 = arith.constant 0 : index
    %3 = vector.load %arg2[%c0_5, %c0_6] : memref<32x64xf32, #tpu.memory_space<vmem>>, vector<32x64xf32>
    %cst = arith.constant dense<0.000000e+00> : vector<8x64xf32>
    %4 = tpu.matmul %0, %3, %cst {dimension_numbers = #tpu.dot_dimension_numbers<[1], [0], [0], [1], [0, 0, 1, 1], [], []>} : vector<8x32xf32>, vector<32x64xf32>, vector<8x64xf32> -> vector<8x64xf32>
    %5 = vector.extract_strided_slice %1 {offsets = [0, 0], sizes = [1, 64], strides = [1, 1]} : vector<6x64xf32> to vector<1x64xf32>
    %6 = vector.broadcast %5 : vector<1x64xf32> to vector<8x64xf32>
    %7 = arith.addf %4, %6 : vector<8x64xf32>
    %8 = vector.extract_strided_slice %1 {offsets = [1, 0], sizes = [1, 64], strides = [1, 1]} : vector<6x64xf32> to vector<1x64xf32>
    %9 = vector.extract_strided_slice %1 {offsets = [2, 0], sizes = [1, 64], strides = [1, 1]} : vector<6x64xf32> to vector<1x64xf32>
    %cst_7 = arith.constant dense<0.000000e+00> : vector<8xf32>
    %10 = vector.multi_reduction <add>, %7, %cst_7 [1] : vector<8x64xf32> to vector<8xf32>
    %11 = vector.shape_cast %10 : vector<8xf32> to vector<8x1xf32>
    %cst_8 = arith.constant 6.400000e+01 : f32
    %12 = vector.broadcast %cst_8 : f32 to vector<8x1xf32>
    %13 = arith.divf %11, %12 : vector<8x1xf32>
    %14 = arith.mulf %7, %7 : vector<8x64xf32>
    %cst_9 = arith.constant dense<0.000000e+00> : vector<8xf32>
    %15 = vector.multi_reduction <add>, %14, %cst_9 [1] : vector<8x64xf32> to vector<8xf32>
    %16 = vector.shape_cast %15 : vector<8xf32> to vector<8x1xf32>
    %cst_10 = arith.constant 6.400000e+01 : f32
    %17 = vector.broadcast %cst_10 : f32 to vector<8x1xf32>
    %18 = arith.divf %16, %17 : vector<8x1xf32>
    %19 = arith.mulf %13, %13 : vector<8x1xf32>
    %20 = arith.subf %18, %19 : vector<8x1xf32>
    %cst_11 = arith.constant 0.000000e+00 : f32
    %21 = vector.broadcast %cst_11 : f32 to vector<8x1xf32>
    %22 = arith.maximumf %20, %21 : vector<8x1xf32>
    %23 = vector.broadcast %13 : vector<8x1xf32> to vector<8x64xf32>
    %24 = arith.subf %7, %23 : vector<8x64xf32>
    %cst_12 = arith.constant 9.99999974E-6 : f32
    %25 = vector.broadcast %cst_12 : f32 to vector<8x1xf32>
    %26 = arith.addf %22, %25 : vector<8x1xf32>
    %27 = math.rsqrt %26 : vector<8x1xf32>
    %28 = vector.broadcast %27 : vector<8x1xf32> to vector<8x64xf32>
    %29 = arith.mulf %24, %28 : vector<8x64xf32>
    %30 = vector.broadcast %8 : vector<1x64xf32> to vector<8x64xf32>
    %31 = arith.mulf %29, %30 : vector<8x64xf32>
    %32 = vector.broadcast %9 : vector<1x64xf32> to vector<8x64xf32>
    %33 = arith.addf %31, %32 : vector<8x64xf32>
    %cst_13 = arith.constant 5.000000e-01 : f32
    %34 = vector.broadcast %cst_13 : f32 to vector<8x64xf32>
    %35 = arith.mulf %34, %33 : vector<8x64xf32>
    %cst_14 = arith.constant 0.707106769 : f32
    %36 = vector.broadcast %cst_14 : f32 to vector<8x64xf32>
    %37 = arith.mulf %33, %36 : vector<8x64xf32>
    %38 = math.erf %37 : vector<8x64xf32>
    %cst_15 = arith.constant 1.000000e+00 : f32
    %39 = vector.broadcast %cst_15 : f32 to vector<8x64xf32>
    %40 = arith.addf %39, %38 : vector<8x64xf32>
    %41 = arith.mulf %35, %40 : vector<8x64xf32>
    %c0_16 = arith.constant 0 : index
    %c0_17 = arith.constant 0 : index
    %42 = vector.load %arg3[%c0_16, %c0_17] : memref<64x64xf32, #tpu.memory_space<vmem>>, vector<64x64xf32>
    %cst_18 = arith.constant dense<0.000000e+00> : vector<8x64xf32>
    %43 = tpu.matmul %41, %42, %cst_18 {dimension_numbers = #tpu.dot_dimension_numbers<[1], [0], [0], [1], [0, 0, 1, 1], [], []>} : vector<8x64xf32>, vector<64x64xf32>, vector<8x64xf32> -> vector<8x64xf32>
    %44 = vector.extract_strided_slice %1 {offsets = [3, 0], sizes = [1, 64], strides = [1, 1]} : vector<6x64xf32> to vector<1x64xf32>
    %45 = vector.broadcast %44 : vector<1x64xf32> to vector<8x64xf32>
    %46 = arith.addf %43, %45 : vector<8x64xf32>
    %47 = vector.extract_strided_slice %1 {offsets = [4, 0], sizes = [1, 64], strides = [1, 1]} : vector<6x64xf32> to vector<1x64xf32>
    %48 = vector.extract_strided_slice %1 {offsets = [5, 0], sizes = [1, 64], strides = [1, 1]} : vector<6x64xf32> to vector<1x64xf32>
    %cst_19 = arith.constant dense<0.000000e+00> : vector<8xf32>
    %49 = vector.multi_reduction <add>, %46, %cst_19 [1] : vector<8x64xf32> to vector<8xf32>
    %50 = vector.shape_cast %49 : vector<8xf32> to vector<8x1xf32>
    %cst_20 = arith.constant 6.400000e+01 : f32
    %51 = vector.broadcast %cst_20 : f32 to vector<8x1xf32>
    %52 = arith.divf %50, %51 : vector<8x1xf32>
    %53 = arith.mulf %46, %46 : vector<8x64xf32>
    %cst_21 = arith.constant dense<0.000000e+00> : vector<8xf32>
    %54 = vector.multi_reduction <add>, %53, %cst_21 [1] : vector<8x64xf32> to vector<8xf32>
    %55 = vector.shape_cast %54 : vector<8xf32> to vector<8x1xf32>
    %cst_22 = arith.constant 6.400000e+01 : f32
    %56 = vector.broadcast %cst_22 : f32 to vector<8x1xf32>
    %57 = arith.divf %55, %56 : vector<8x1xf32>
    %58 = arith.mulf %52, %52 : vector<8x1xf32>
    %59 = arith.subf %57, %58 : vector<8x1xf32>
    %cst_23 = arith.constant 0.000000e+00 : f32
    %60 = vector.broadcast %cst_23 : f32 to vector<8x1xf32>
    %61 = arith.maximumf %59, %60 : vector<8x1xf32>
    %62 = vector.broadcast %52 : vector<8x1xf32> to vector<8x64xf32>
    %63 = arith.subf %46, %62 : vector<8x64xf32>
    %cst_24 = arith.constant 9.99999974E-6 : f32
    %64 = vector.broadcast %cst_24 : f32 to vector<8x1xf32>
    %65 = arith.addf %61, %64 : vector<8x1xf32>
    %66 = math.rsqrt %65 : vector<8x1xf32>
    %67 = vector.broadcast %66 : vector<8x1xf32> to vector<8x64xf32>
    %68 = arith.mulf %63, %67 : vector<8x64xf32>
    %69 = vector.broadcast %47 : vector<1x64xf32> to vector<8x64xf32>
    %70 = arith.mulf %68, %69 : vector<8x64xf32>
    %71 = vector.broadcast %48 : vector<1x64xf32> to vector<8x64xf32>
    %72 = arith.addf %70, %71 : vector<8x64xf32>
    %cst_25 = arith.constant 5.000000e-01 : f32
    %73 = vector.broadcast %cst_25 : f32 to vector<8x64xf32>
    %74 = arith.mulf %73, %72 : vector<8x64xf32>
    %cst_26 = arith.constant 0.707106769 : f32
    %75 = vector.broadcast %cst_26 : f32 to vector<8x64xf32>
    %76 = arith.mulf %72, %75 : vector<8x64xf32>
    %77 = math.erf %76 : vector<8x64xf32>
    %cst_27 = arith.constant 1.000000e+00 : f32
    %78 = vector.broadcast %cst_27 : f32 to vector<8x64xf32>
    %79 = arith.addf %78, %77 : vector<8x64xf32>
    %80 = arith.mulf %74, %79 : vector<8x64xf32>
    %81 = arith.addf %80, %41 : vector<8x64xf32>
    %c0_28 = arith.constant 0 : index
    %c0_29 = arith.constant 0 : index
    %82 = vector.load %arg4[%c0_28, %c0_29] : memref<64x32xf32, #tpu.memory_space<vmem>>, vector<64x32xf32>
    %cst_30 = arith.constant dense<0.000000e+00> : vector<8x32xf32>
    %83 = tpu.matmul %81, %82, %cst_30 {dimension_numbers = #tpu.dot_dimension_numbers<[1], [0], [0], [1], [0, 0, 1, 1], [], []>} : vector<8x64xf32>, vector<64x32xf32>, vector<8x32xf32> -> vector<8x32xf32>
    %84 = vector.extract_strided_slice %2 {offsets = [0, 0], sizes = [1, 32], strides = [1, 1]} : vector<3x32xf32> to vector<1x32xf32>
    %85 = vector.broadcast %84 : vector<1x32xf32> to vector<8x32xf32>
    %86 = arith.addf %83, %85 : vector<8x32xf32>
    %87 = vector.extract_strided_slice %2 {offsets = [1, 0], sizes = [1, 32], strides = [1, 1]} : vector<3x32xf32> to vector<1x32xf32>
    %88 = vector.extract_strided_slice %2 {offsets = [2, 0], sizes = [1, 32], strides = [1, 1]} : vector<3x32xf32> to vector<1x32xf32>
    %cst_31 = arith.constant dense<0.000000e+00> : vector<8xf32>
    %89 = vector.multi_reduction <add>, %86, %cst_31 [1] : vector<8x32xf32> to vector<8xf32>
    %90 = vector.shape_cast %89 : vector<8xf32> to vector<8x1xf32>
    %cst_32 = arith.constant 3.200000e+01 : f32
    %91 = vector.broadcast %cst_32 : f32 to vector<8x1xf32>
    %92 = arith.divf %90, %91 : vector<8x1xf32>
    %93 = arith.mulf %86, %86 : vector<8x32xf32>
    %cst_33 = arith.constant dense<0.000000e+00> : vector<8xf32>
    %94 = vector.multi_reduction <add>, %93, %cst_33 [1] : vector<8x32xf32> to vector<8xf32>
    %95 = vector.shape_cast %94 : vector<8xf32> to vector<8x1xf32>
    %cst_34 = arith.constant 3.200000e+01 : f32
    %96 = vector.broadcast %cst_34 : f32 to vector<8x1xf32>
    %97 = arith.divf %95, %96 : vector<8x1xf32>
    %98 = arith.mulf %92, %92 : vector<8x1xf32>
    %99 = arith.subf %97, %98 : vector<8x1xf32>
    %cst_35 = arith.constant 0.000000e+00 : f32
    %100 = vector.broadcast %cst_35 : f32 to vector<8x1xf32>
    %101 = arith.maximumf %99, %100 : vector<8x1xf32>
    %102 = vector.broadcast %92 : vector<8x1xf32> to vector<8x32xf32>
    %103 = arith.subf %86, %102 : vector<8x32xf32>
    %cst_36 = arith.constant 9.99999974E-6 : f32
    %104 = vector.broadcast %cst_36 : f32 to vector<8x1xf32>
    %105 = arith.addf %101, %104 : vector<8x1xf32>
    %106 = math.rsqrt %105 : vector<8x1xf32>
    %107 = vector.broadcast %106 : vector<8x1xf32> to vector<8x32xf32>
    %108 = arith.mulf %103, %107 : vector<8x32xf32>
    %109 = vector.broadcast %87 : vector<1x32xf32> to vector<8x32xf32>
    %110 = arith.mulf %108, %109 : vector<8x32xf32>
    %111 = vector.broadcast %88 : vector<1x32xf32> to vector<8x32xf32>
    %112 = arith.addf %110, %111 : vector<8x32xf32>
    %cst_37 = arith.constant 5.000000e-01 : f32
    %113 = vector.broadcast %cst_37 : f32 to vector<8x32xf32>
    %114 = arith.mulf %113, %112 : vector<8x32xf32>
    %cst_38 = arith.constant 0.707106769 : f32
    %115 = vector.broadcast %cst_38 : f32 to vector<8x32xf32>
    %116 = arith.mulf %112, %115 : vector<8x32xf32>
    %117 = math.erf %116 : vector<8x32xf32>
    %cst_39 = arith.constant 1.000000e+00 : f32
    %118 = vector.broadcast %cst_39 : f32 to vector<8x32xf32>
    %119 = arith.addf %118, %117 : vector<8x32xf32>
    %120 = arith.mulf %114, %119 : vector<8x32xf32>
    %c0_40 = arith.constant 0 : index
    %c0_41 = arith.constant 0 : index
    %121 = vector.load %arg5[%c0_40, %c0_41] : memref<32x8xf32, #tpu.memory_space<vmem>>, vector<32x8xf32>
    %cst_42 = arith.constant dense<0.000000e+00> : vector<8x8xf32>
    %122 = tpu.matmul %120, %121, %cst_42 {dimension_numbers = #tpu.dot_dimension_numbers<[1], [0], [0], [1], [0, 0, 1, 1], [], []>} : vector<8x32xf32>, vector<32x8xf32>, vector<8x8xf32> -> vector<8x8xf32>
    %c0_43 = arith.constant 0 : index
    %c0_44 = arith.constant 0 : index
    %123 = vector.load %arg8[%c0_43, %c0_44] : memref<1x8xf32, #tpu.memory_space<vmem>>, vector<1x8xf32>
    %124 = vector.broadcast %123 : vector<1x8xf32> to vector<8x8xf32>
    %125 = arith.addf %122, %124 : vector<8x8xf32>
    %c0_45 = arith.constant 0 : index
    %c0_46 = arith.constant 0 : index
    %126 = vector.load %arg9[%c0_45, %c0_46] : memref<8x8xf32, #tpu.memory_space<vmem>>, vector<8x8xf32>
    tpu.vector_store %arg9[%c0_45, %c0_46], %125 {strides = array<i32>} : memref<8x8xf32, #tpu.memory_space<vmem>>, vector<8x8xf32>,
    return
  }
  func.func @transform_0(%arg0: i32) -> (i32, i32) {
    %c0_i32 = arith.constant 0 : i32
    %c0_i32_0 = arith.constant 0 : i32
    return %arg0, %c0_i32 : i32, i32
  }
  func.func @transform_1(%arg0: i32) -> (i32, i32) {
    %c0_i32 = arith.constant 0 : i32
    %c0_i32_0 = arith.constant 0 : i32
    %c0_i32_1 = arith.constant 0 : i32
    return %c0_i32, %c0_i32_0 : i32, i32
  }
  func.func @transform_2(%arg0: i32) -> (i32, i32) {
    %c0_i32 = arith.constant 0 : i32
    %c0_i32_0 = arith.constant 0 : i32
    %c0_i32_1 = arith.constant 0 : i32
    return %c0_i32, %c0_i32_0 : i32, i32
  }
  func.func @transform_3(%arg0: i32) -> (i32, i32) {
    %c0_i32 = arith.constant 0 : i32
    %c0_i32_0 = arith.constant 0 : i32
    %c0_i32_1 = arith.constant 0 : i32
    return %c0_i32, %c0_i32_0 : i32, i32
  }
  func.func @transform_4(%arg0: i32) -> (i32, i32) {
    %c0_i32 = arith.constant 0 : i32
    %c0_i32_0 = arith.constant 0 : i32
    %c0_i32_1 = arith.constant 0 : i32
    return %c0_i32, %c0_i32_0 : i32, i32
  }
  func.func @transform_5(%arg0: i32) -> (i32, i32) {
    %c0_i32 = arith.constant 0 : i32
    %c0_i32_0 = arith.constant 0 : i32
    %c0_i32_1 = arith.constant 0 : i32
    return %c0_i32, %c0_i32_0 : i32, i32
  }
  func.func @transform_6(%arg0: i32) -> (i32, i32) {
    %c0_i32 = arith.constant 0 : i32
    %c0_i32_0 = arith.constant 0 : i32
    %c0_i32_1 = arith.constant 0 : i32
    return %c0_i32, %c0_i32_0 : i32, i32
  }
  func.func @transform_7(%arg0: i32) -> (i32, i32) {
    %c0_i32 = arith.constant 0 : i32
    %c0_i32_0 = arith.constant 0 : i32
    %c0_i32_1 = arith.constant 0 : i32
    return %c0_i32, %c0_i32_0 : i32, i32
  }
  func.func @transform_8(%arg0: i32) -> (i32, i32) {
    %c0_i32 = arith.constant 0 : i32
    %c0_i32_0 = arith.constant 0 : i32
    return %arg0, %c0_i32 : i32, i32
  }
}

</mosaic_0001>

<bundles_post_ra>
// kernel: tpu_custom_call.1
= control target key start
LH: loop header
LB: loop body
LE: loop exit
PB: predicated region body
PF: predicated region fallthrough
CT: control target
= control target key end

     0   :  { %13 = vsyncpa [#allocation3], 0  ;;  %s1378_s0 = inlined_call_operand.hbm [shape: f32[24,32], index: 0, kind: input, shape index: {}]   ;;  %s1379_s1 = inlined_call_operand.vmem [shape: f32[32,64], index: 1, kind: input, shape index: {}]   ;;  %s1380_s2 = inlined_call_operand.vmem [shape: f32[64,64], index: 2, kind: input, shape index: {}]   ;;  %s1381_s3 = inlined_call_operand.vmem [shape: f32[64,32], index: 3, kind: input, shape index: {}]   ;;  %s1382_s4 = inlined_call_operand.vmem [shape: f32[32,8], index: 4, kind: input, shape index: {}]   ;;  %s1383_s5 = inlined_call_operand.vmem [shape: f32[6,64], index: 5, kind: input, shape index: {}]   ;;  %s1384_s6 = inlined_call_operand.vmem [shape: f32[3,32], index: 6, kind: input, shape index: {}]   ;;  %s1385_s7 = inlined_call_operand.vmem [shape: f32[1,8], index: 7, kind: input, shape index: {}]   ;;  %s1386_s8 = inlined_call_operand.vmem [shape: f32[24,8], index: 8, kind: output, shape index: {}]  }
   0x1   :  { %15 = vsyncpa [#allocation3 + $0x1], 0  ;;  %s1132_s27 = smov 0   ;;  %s1134_s28 = smov 0  }
   0x2   :  { %s1136_s29 = smov 0   ;;  %s1138_s30 = smov 0  }
   0x3 LB: > { %s1151_s9 = sadd.s32 4294967295, %s1081_s30   ;;  %s1154_s10 = sadd.s32 1, %s1081_s30   ;;  %s1081_s30 = sphi %s1138_s30, %s1394_s30   ;;  %s1077_s29 = sphi %s1136_s29, %s1393_s29   ;;  %s1073_s28 = sphi %s1134_s28, %s1392_s28   ;;  %s1069_s27 = sphi %s1132_s27, %s1391_s27  }
   0x4   : > { %s25_s11 = ssub.s32 %s1081_s30, %s1154_s10  ;;  %s28_s12 = sadd.s32 1, %s1077_s29 }
   0x5   : > { %p26_p0 = scmp.eq.s32.totalorder %s25_s11, 0  ;;  %p35_p1 = scmp.ne.s32.totalorder %s1077_s29, %s1073_s28 }
   0x6   : > { %p36_p2 = scmp.eq.s32.totalorder %s1081_s30, 0  ;;  %p41_p3 = scmp.ne.s32.totalorder %s1073_s28, %s1069_s27 }
   0x7   : > { %s1164_s13 = scalar_select %p26_p0, %s1077_s29, %s28_s12  }
   0x8   : > { %p37_p4 = por %p36_p2, %p35_p1  ;;  %p42_p5 = scmp.eq.s32.totalorder %s1151_s9, 0 }
   0x9   : > { %p969_p6 = scmp.lt.s32.totalorder %s1081_s30, 3  ;;  %s259_s15 = sand.u32 1, %s1077_s29  }
   0xa   : > { %p1168_p7 = por %p42_p5, %p41_p3  ;;  %s827_s16 = sshll.u32 %s259_s15, 3 }
   0xb   : > { %s828_s17 = sshll.u32 %s1081_s30, 7  ;;  %s263_s21 = scalar_lea.vmem [#allocation2], %s827_s16 }
   0xc   : > { %s1177_s20 = scalar_lea.hbm %s1378_s0, %s828_s17  ;;  %s270_s22 = sshll.u32 %s263_s21, 4  ;;  %s1179_s22 = int_to_ptr.vmem [resolvable:$true] %s270_s22 }
   0xd   : > { %p1181_p8 = pnand %p969_p6, %p37_p4  ;;  %s260_s24 = scalar_lea.sflag [#allocation3], %s259_s15 }
   0xe   : > { %s1017_s25 = scalar_lea.hbm %s1177_s20, 128  ;;  %s1022_s11 = scalar_lea.hbm %s1378_s0, 384 }
   0xf   : > { %p1018_p11 = scmp.ne.s32.totalorder %s1177_s20, %s1017_s25  ;;  %p1019_p12 = pneg %p1181_p8 }
  0x10   : > { %p1023_p1 = scmp.lt.u32.totalorder %s1177_s20, %s1378_s0  ;;  %p1024_p2 = scmp.lt.u32.totalorder %s1022_s11, %s1017_s25 }
  0x11   : > { %p1020_p13 = pnand %p1019_p12, %p1018_p11  ;;  %p1026_p4 = scmp.lt.u32.totalorder %s1017_s25, %s1177_s20 }
  0x12   : > { %p1025_p3 = por %p1024_p2, %p1023_p1 }
  0x13   : > { %p1021_p0 = pneg %p1020_p13 }
  0x14   : > { %p1027_p5 = por %p1026_p4, %p1025_p3 }
  0x16   : > { %p1028_p6 = pnand %p1027_p5, %p1021_p0 }
  0x18   : > { %1031 = shalt.err (!%p1028_p6)
}
  0x19   : > { %s1032_s15 = scalar_lea.vmem %s1179_s22, 128  ;;  %s1083_s17 = smov [#allocation2]  }
  0x1a   : > { %p1033_p11 = scmp.ne.s32.totalorder %s1179_s22, %s1032_s15  ;;  %s1037_s18 = sshll.u32 %s1083_s17, 4  ;;  %s1038_s18 = int_to_ptr.vmem [resolvable:$false] %s1037_s18 }
  0x1b   : > { %s1039_s19 = scalar_lea.vmem %s1038_s18, 256  ;;  %p1040_p10 = scmp.lt.s32.totalorder %s1179_s22, %s1038_s18 }
  0x1c   : > { %p1035_p13 = pnand %p1033_p11, %p1019_p12  ;;  %p1041_p1 = scmp.lt.s32.totalorder %s1039_s19, %s1032_s15 }
  0x1e   : > { %p1036_p9 = pneg %p1035_p13  ;;  %p1042_p2 = por %p1041_p1, %p1040_p10 }
  0x20   : > { %p1043_p3 = pnand %p1042_p2, %p1036_p9 }
  0x22   : > { %1046 = shalt.err (!%p1043_p3)
}
  0x23   : > { %968 = dma.hbm_to_vmem [thread:$0]  (!%p1181_p8), %s1177_s20, 128, %s1179_s22, %s260_s24  }
  0x24   : > { %p1389_p0 = scmp.lt.s32.totalorder %s1081_s30, 4  ;;  %p1390_p4 = scmp.ge.s32.totalorder %s1081_s30, 1 }
  0x26   : > { %p276_p12 = pnand %p1390_p4, %p1389_p0 }
  0x27   : > { %s281_s21 = sand.u32 (!%p276_p12), 1, %s1073_s28  }
  0x28   : > { %279 = sbr.rel (%p276_p12) target bundleno = 1482 (0x5ca), region = 52  ;;  %s830_s25 = sshll.u32 (!%p276_p12), %s281_s21, 3 }
  0x29   : > { %s282_s26 = scalar_lea.sflag (!%p276_p12), [#allocation3], %s281_s21  ;;  %s285_s27 = scalar_lea.vmem (!%p276_p12), [#allocation2], %s830_s25 }
  0x2f   : > { %1064 = dma.done.wait (%p1168_p7), %s282_s26, 128  }
  0x30   : > { %1066 = vsyncadd (%p1168_p7), %s282_s26, 4294967168  ;;  %v1084_v0 = vmov 0.0|0.0   ;;  %vm1085_vm0 = vmmov 0   ;;  %v1086_v1 = vmov 0.0   ;;  %v324_v2 = vld [vmem:[%s1379_s1] sm:$0xff]  ;;  %v325_v3 = vld [vmem:[%s1379_s1 + $0x8] sm:$0xff]  ;;  %v328_v9 = vlaneseq }
  0x31   : > { %927 = vmatprep.subr.bf16.mxu0 %v1084_v0  ;;  %875 = vmatprep.mubr.msk.f32.mxu0 %vm1085_vm0, %v1086_v1  ;;  %v326_v4 = vld [vmem:[%s1379_s1 + $0x10] sm:$0xff]  ;;  %v928_v5 = vpack.c.bf16 %v325_v3, %v324_v2  ;;  %v327_v6 = vld [vmem:[%s1379_s1 + $0x18] sm:$0xff]  ;;  %v321_v8 = vld [vmem:[%s285_s27] sm:$0xff]  ;;  %vm332_vm1 = vcmask 261120   ;;  %vm406_vm2 = vcmask 523264   ;;  %p317_p7 = scmp.lt.s32.totalorder %s1151_s9, 2 }
  0x32   : > { %933 = vmatprep.subr.bf16.mxu1 %v1084_v0  ;;  %894 = vmatprep.mubr.msk.f32.mxu1 %vm1085_vm0, %v1086_v1  ;;  %v931_v7 = vpack.c.bf16 %v327_v6, %v326_v4  ;;  %v1244_v10 = vshrl.u32 %v328_v9, 7  ;;  %v1250_v12 = vld [vmem:[%s1383_s5] sm:$0x3f]  ;;  %v440_v21 = vld [vmem:[%s1380_s2 + $0x8] sm:$0xff]  ;;  %v441_v22 = vld [vmem:[%s1380_s2 + $0x10] sm:$0xff]  ;;  %vm757_vm3 = vcmask 64512  }
  0x33   : > { %929 = vmatpush3.bf16.msra.mxu0 %v928_v5  ;;  %v439_v20 = vld [vmem:[%s1380_s2] sm:$0xff]  ;;  %v442_v24 = vld [vmem:[%s1380_s2 + $0x18] sm:$0xff]  ;;  %v444_v27 = vld [vmem:[%s1380_s2 + $0x28] sm:$0xff]  ;;  %s1396_s9 = smov (!%p317_p7, %s1151_s9), 2 }
  0x34   : > { %930 = vmatprep.subr.bf16.mxu0 %v1084_v0  ;;  %v330_v11 = vsub.s32 0, %v1244_v10  ;;  %v934_v23 = vpack.c.bf16 %v440_v21, %v439_v20  ;;  %v937_v25 = vpack.c.bf16 %v442_v24, %v441_v22  ;;  %v443_v26 = vld [vmem:[%s1380_s2 + $0x20] sm:$0xff]  ;;  %v445_v29 = vld [vmem:[%s1380_s2 + $0x30] sm:$0xff]  ;;  %v446_v30 = vld [vmem:[%s1380_s2 + $0x38] sm:$0xff]  ;;  %v426_v40 = vsub.s32 1, %v1244_v10  ;;  %s831_s20 = sshll.u32 %s1396_s9, 3 }
  0x35   : > { %v940_v28 = vpack.c.bf16 %v444_v27, %v443_v26  ;;  %v943_v31 = vpack.c.bf16 %v446_v30, %v445_v29  ;;  %v431_v41 = vsub.s32 2, %v1244_v10  ;;  %v449_v54 = vsub.s32 3, %v1244_v10  ;;  %v556_v62 = vld [vmem:[%s1381_s3] sm:$0xff]  ;;  %v557_v63 = vld [vmem:[%s1381_s3 + $0x8] sm:$0xff]  ;;  %v559_v3 = vld [vmem:[%s1381_s3 + $0x18] sm:$0xff]  ;;  %s320_s11 = scalar_lea.vmem %s1386_s8, %s831_s20 }
  0x36   : > { %v331_v13 = vrot.slane %v1250_v12, %v330_v11  ;;  %935 = vmatpush3.bf16.msra.mxu1 %v934_v23  ;;  %v427_v43 = vrot.slane %v1250_v12, %v426_v40  ;;  %v946_v2 = vpack.c.bf16 %v557_v63, %v556_v62  ;;  %v560_v5 = vld [vmem:[%s1381_s3 + $0x20] sm:$0xff]  ;;  %v561_v6 = vld [vmem:[%s1381_s3 + $0x28] sm:$0xff]  ;;  %v563_v9 = vld [vmem:[%s1381_s3 + $0x38] sm:$0xff]  ;;  %v542_v22 = vsub.s32 4, %v1244_v10 }
  0x37   : > { %932 = vmatpush3.bf16.msra.mxu0 %v931_v7  ;;  %936 = vmatprep.subr.bf16.mxu1 %v1084_v0  ;;  %v432_v46 = vrot.slane %v1250_v12, %v431_v41  ;;  %v450_v55 = vrot.slane %v1250_v12, %v449_v54  ;;  %v952_v7 = vpack.c.bf16 %v561_v6, %v560_v5  ;;  %v547_v23 = vsub.s32 5, %v1244_v10 }
  0x38   : > { %945 = vmatprep.subr.bf16.mxu0 %v1084_v0 }
  0x3a   : > { %876 = vmatmul.mubr.msk.f32.vlgmr.msra.gmra.mrb[0].mxu0 %vm332_vm1, %v321_v8  ;;  %938 = vmatpush3.bf16.msra.mxu1 %v937_v25  ;;  %v562_v8 = vld [vmem:[%s1381_s3 + $0x30] sm:$0xff]  ;;  %v543_v25 = vrot.slane %v1250_v12, %v542_v22 }
  0x3b   : > { %913 = vmatprep.mubr.msk.f32.mxu0 %vm1085_vm0, %v1086_v1  ;;  %939 = vmatprep.subr.bf16.mxu1 %v1084_v0 }
  0x3c   : > { %947 = vmatpush3.bf16.msra.mxu0 %v946_v2 }
  0x3d   : > { %948 = vmatprep.subr.bf16.mxu0 %v1084_v0 }
  0x3e   : > { %941 = vmatpush3.bf16.msra.mxu1 %v940_v28  ;;  %v548_v28 = vrot.slane %v1250_v12, %v547_v23 }
  0x3f   : > { %942 = vmatprep.subr.bf16.mxu1 %v1084_v0 }
  0x42   : > { %944 = vmatpush3.bf16.msra.mxu1 %v943_v31 }
  0x43   : > { %957 = vmatprep.subr.bf16.mxu1 %v1084_v0 }
 0x10d   : > { %v402_v14 = vpop.f32.mrb[0].mxu0 }
 0x10e   : > { %v403_v15 = vadd.f32 %v402_v14, %v331_v13  ;;  %v877_v16 = vpop.f32.mrb[1].mxu0  ;;  %v955_v13 = vpack.c.bf16 %v563_v9, %v562_v8 }
 0x110   : > { %v407_v17 = vsel %vm406_vm2, %v403_v15, 0.0  ;;  %v412_v18 = vmul.f32 %v403_v15, %v403_v15 }
 0x111   : > { %408 = vadd.xlane.f32.xlu0 %v407_v17 }
 0x112   : > { %v413_v19 = vsel %vm406_vm2, %v412_v18, 0.0 }
 0x115   : > { %414 = vadd.xlane.f32.xlu0 %v413_v19 }
 0x19e   : > { %v409_v32 = vpop.xlane.xlu0 %408 }
 0x19f   : > { %v411_v33 = vmul.f32 0.015625, %v409_v32 }
 0x1a1   : > { %v417_v35 = vmul.f32 %v411_v33, %v411_v33  ;;  %v420_v42 = vsub.f32 %v403_v15, %v411_v33 }
 0x1a2   : > { %v415_v34 = vpop.xlane.xlu0 %414 }
 0x1a3   : > { %v416_v36 = vmul.f32 0.015625, %v415_v34 }
 0x1a5   : > { %v418_v37 = vsub.f32 %v416_v36, %v417_v35 }
 0x1a7   : > { %v419_v38 = vmax.f32 %v418_v37, 0.0  ;;  %v323_v37 = vld [vmem:[%s1384_s6] sm:$0x7] }
 0x1a9   : > { %v421_v39 = vadd.f32 1e-05, %v419_v38  ;;  %v567_v38 = vrot.slane %v323_v37, %v330_v11  ;;  %v675_v11 = vld [vmem:[%s1382_s4 + $0x10] sm:$0xff] }
 0x1ab   : > { %1005 = vrsqrt.f32 %v421_v39 }
 0x1b5   : > { %v1006_v44 = vpop.eup %1005 }
 0x1b6   : > { %v423_v45 = vmul.f32 %v1006_v44, %v420_v42 }
 0x1b8   : > { %v428_v47 = vmul.f32 %v427_v43, %v423_v45 }
 0x1ba   : > { %v433_v48 = vadd.f32 %v432_v46, %v428_v47  ;;  %v673_v46 = vld [vmem:[%s1382_s4] sm:$0xff]  ;;  %v674_v47 = vld [vmem:[%s1382_s4 + $0x8] sm:$0xff] }
 0x1bc   : > { %v435_v49 = vmul.f32 0.70710677, %v433_v48  ;;  %v434_v51 = vmul.f32 0.5, %v433_v48  ;;  %v958_v48 = vpack.c.bf16 %v674_v47, %v673_v46 }
 0x1be   : > { %1007 = verf.f32 %v435_v49  ;;  %v676_v49 = vld [vmem:[%s1382_s4 + $0x18] sm:$0xff] }
 0x1c8   : > { %v1008_v50 = vpop.eup %1007 }
 0x1c9   : > { %v437_v52 = vadd.f32 1.0, %v1008_v50  ;;  %v961_v50 = vpack.c.bf16 %v676_v49, %v675_v11 }
 0x1cb   : > { %v438_v53 = vmul.f32 %v437_v52, %v434_v51 }
 0x1cd   : > { %895 = vmatmul.mubr.msk.f32.vlgmr.msra.gmra.mrb[0].mxu1 %vm406_vm2, %v438_v53 }
 0x1ce   : > { %924 = vmatprep.mubr.msk.f32.mxu1 %vm1085_vm0, %v1086_v1  ;;  %v558_v1 = vld [vmem:[%s1381_s3 + $0x10] sm:$0xff]  ;;  %959 = vmatpush3.bf16.msra.mxu1 %v958_v48 }
 0x1cf   : > { %v949_v4 = vpack.c.bf16 %v559_v3, %v558_v1  ;;  %960 = vmatprep.subr.bf16.mxu1 %v1084_v0 }
 0x1d1   : > { %950 = vmatpush3.bf16.msra.mxu0 %v949_v4 }
 0x1d2   : > { %951 = vmatprep.subr.bf16.mxu0 %v1084_v0  ;;  %962 = vmatpush3.bf16.msra.mxu1 %v961_v50 }
 0x1d5   : > { %953 = vmatpush3.bf16.msra.mxu0 %v952_v7 }
 0x1d6   : > { %954 = vmatprep.subr.bf16.mxu0 %v1084_v0  ;;  %v666_v0 = vrot.slane %v323_v37, %v431_v41 }
 0x1d9   : > { %956 = vmatpush3.bf16.msra.mxu0 %v955_v13 }
 0x2a0   : > { %v520_v56 = vpop.f32.mrb[0].mxu1 }
 0x2a1   : > { %v521_v57 = vadd.f32 %v520_v56, %v450_v55  ;;  %v896_v58 = vpop.f32.mrb[1].mxu1 }
 0x2a3   : > { %v524_v59 = vsel %vm406_vm2, %v521_v57, 0.0  ;;  %v528_v60 = vmul.f32 %v521_v57, %v521_v57 }
 0x2a4   : > { %525 = vadd.xlane.f32.xlu1 %v524_v59  ;;  %v661_v59 = vrot.slane %v323_v37, %v426_v40  ;;  %v835_v40 = vld [vmem:[%s1385_s7] ss:$0 sm:$0xff] }
 0x2a5   : > { %v529_v61 = vsel %vm406_vm2, %v528_v60, 0.0 }
 0x2a8   : > { %530 = vadd.xlane.f32.xlu1 %v529_v61 }
 0x331   : > { %v526_v14 = vpop.xlane.xlu1 %525 }
 0x332   : > { %v527_v15 = vmul.f32 0.015625, %v526_v14 }
 0x334   : > { %v533_v17 = vmul.f32 %v527_v15, %v527_v15  ;;  %v536_v24 = vsub.f32 %v521_v57, %v527_v15 }
 0x335   : > { %v531_v16 = vpop.xlane.xlu1 %530 }
 0x336   : > { %v532_v18 = vmul.f32 0.015625, %v531_v16 }
 0x338   : > { %v534_v19 = vsub.f32 %v532_v18, %v533_v17 }
 0x33a   : > { %v535_v20 = vmax.f32 %v534_v19, 0.0 }
 0x33c   : > { %v537_v21 = vadd.f32 1e-05, %v535_v20 }
 0x33e   : > { %1009 = vrsqrt.f32 %v537_v21 }
 0x348   : > { %v1010_v26 = vpop.eup %1009 }
 0x349   : > { %v539_v27 = vmul.f32 %v1010_v26, %v536_v24 }
 0x34b   : > { %v544_v29 = vmul.f32 %v543_v25, %v539_v27 }
 0x34d   : > { %v549_v30 = vadd.f32 %v548_v28, %v544_v29 }
 0x34f   : > { %v551_v31 = vmul.f32 0.70710677, %v549_v30  ;;  %v550_v33 = vmul.f32 0.5, %v549_v30 }
 0x351   : > { %1011 = verf.f32 %v551_v31 }
 0x35b   : > { %v1012_v32 = vpop.eup %1011 }
 0x35c   : > { %v553_v34 = vadd.f32 1.0, %v1012_v32 }
 0x35e   : > { %v554_v35 = vmul.f32 %v553_v34, %v550_v33 }
 0x360   : > { %v555_v36 = vadd.f32 %v554_v35, %v438_v53 }
 0x362   : > { %914 = vmatmul.mubr.msk.f32.vlgmr.msra.gmra.mrb[2].mxu0 %vm406_vm2, %v555_v36 }
 0x435   : > { %v637_v39 = vpop.f32.mrb[2].mxu0 }
 0x436   : > { %v638_v12 = vadd.f32 %v637_v39, %v567_v38  ;;  %v915_v42 = vpop.f32.mrb[3].mxu0 }
 0x438   : > { %v641_v43 = vsel %vm332_vm1, %v638_v12, 0.0  ;;  %v646_v44 = vmul.f32 %v638_v12, %v638_v12 }
 0x439   : > { %642 = vadd.xlane.f32.xlu0 %v641_v43 }
 0x43a   : > { %v647_v45 = vsel %vm332_vm1, %v646_v44, 0.0 }
 0x43b   : > { %648 = vadd.xlane.f32.xlu1 %v647_v45 }
 0x4c6   : > { %v643_v51 = vpop.xlane.xlu0 %642 }
 0x4c7   : > { %v645_v52 = vmul.f32 0.03125, %v643_v51 }
 0x4c8   : > { %v649_v53 = vpop.xlane.xlu1 %648 }
 0x4c9   : > { %v651_v54 = vmul.f32 %v645_v52, %v645_v52  ;;  %v650_v55 = vmul.f32 0.03125, %v649_v53  ;;  %v654_v60 = vsub.f32 %v638_v12, %v645_v52 }
 0x4cb   : > { %v652_v56 = vsub.f32 %v650_v55, %v651_v54 }
 0x4cd   : > { %v653_v57 = vmax.f32 %v652_v56, 0.0 }
 0x4cf   : > { %v655_v58 = vadd.f32 1e-05, %v653_v57 }
 0x4d1   : > { %1013 = vrsqrt.f32 %v655_v58 }
 0x4db   : > { %v1014_v61 = vpop.eup %1013 }
 0x4dc   : > { %v657_v62 = vmul.f32 %v1014_v61, %v654_v60 }
 0x4de   : > { %v662_v63 = vmul.f32 %v661_v59, %v657_v62 }
 0x4e0   : > { %v667_v1 = vadd.f32 %v666_v0, %v662_v63 }
 0x4e2   : > { %v669_v2 = vmul.f32 0.70710677, %v667_v1  ;;  %v668_v4 = vmul.f32 0.5, %v667_v1 }
 0x4e4   : > { %1015 = verf.f32 %v669_v2 }
 0x4ee   : > { %v1016_v3 = vpop.eup %1015 }
 0x4ef   : > { %v671_v5 = vadd.f32 1.0, %v1016_v3 }
 0x4f1   : > { %v672_v6 = vmul.f32 %v671_v5, %v668_v4 }
 0x4f3   : > { %925 = vmatmul.mubr.msk.f32.vlgmr.msra.gmra.mrb[2].mxu1 %vm332_vm1, %v672_v6 }
 0x5c6   : > { %v753_v10 = vpop.f32.mrb[2].mxu1 }
 0x5c7   : > { %v754_v41 = vadd.f32 %v835_v40, %v753_v10  ;;  %v926_v7 = vpop.f32.mrb[3].mxu1 }
 0x5c9   : > { %758 = vst.msk [vmem:[%s320_s11] sm:$0xff] %vm757_vm3, %v754_v41 }
 0x5ca PF: > { %p18_p8 = scmp.ge.s32.totalorder %s1154_s10, 5   ;;  %s1391_s27 = smov %s1073_s28 }
 0x5cb   : > { %s1392_s28 = smov %s1077_s29  ;;  %s1393_s29 = smov %s1164_s13 }
 0x5cc   : > { %s1394_s30 = smov %s1154_s10  ;;  %20 = sbr.rel (!%p18_p8) target bundleno = 3 (0x3), region = 92 }
 0x5d3   :  { %778 = vsyncpa [#allocation3], 1 }
 0x5d4   :  { %780 = vsyncpa [#allocation3 + $0x1], 1 }

</bundles_post_ra>
